<compile_context>
chip_gen: v7x
topology: tpu7x:2x2x1
jax: 0.10.0
libtpu: 0.0.40
codegen_flags: <defaults>
</compile_context>

<pallas_src>
import jax
import jax.numpy as jnp
from jax.experimental import pallas as pl
from jax.experimental.pallas import tpu as pltpu


def _global_max_pool_kernel(x_ref, o_ref):
    # x_ref: (TB, C, TL) block in VMEM. Reduce over the channel axis (axis=1),
    # which is the sublane direction of the block -> XLU sublane reduce.
    o_ref[...] = jnp.max(x_ref[...], axis=1)


_LANE = 128
_SUBLANE = 8
_MiB = 1024 * 1024
# Below this total input size a (1,1) grid is fine (no forced split).
_SPLIT_THRESHOLD = 8 * _MiB


def _vmem_budgets():
    """Returns (per-buffer input-block budget, vmem_limit clamp) in bytes."""
    cap = None
    try:
        info = pltpu.get_tpu_info()
        cap = getattr(info, "vmem_capacity_bytes", None)
    except Exception:
        cap = None
    if cap is not None and cap > 64 * _MiB:
        # 128 MiB parts (v5e / v6e): big streaming blocks, generous limit.
        return 32 * _MiB, 100 * _MiB
    # 64 MiB-per-TC parts (v7x) or unknown: stay well under physical VMEM so
    # double-buffered blocks + compiler scratch always fit.
    return 12 * _MiB, 48 * _MiB


def _packed_sublane(itemsize):
    # Sub-32-bit dtypes pack along sublanes: 8 rows f32, 16 bf16, 32 int8/fp8.
    return _SUBLANE * max(1, 4 // itemsize)


def _choose_tiles(B, C, L, itemsize, budget):
    sub = _packed_sublane(itemsize)

    # --- batch tile (chosen against a 128-lane base tile) ---
    tl0 = L if L <= _LANE else _LANE
    per_batch_row = (C * tl0 + tl0) * itemsize  # input + output bytes per row
    tb_cap = max(0, budget // max(1, per_batch_row))
    if tb_cap >= B:
        tb = B                                  # full extent -> always legal
    elif tb_cap >= sub:
        tb = (tb_cap // sub) * sub              # sublane-aligned, <= cap
    else:
        tb = max(1, tb_cap)                     # never overshoot the budget

    # --- length tile: grow in 128-multiples until the budget is filled ---
    if L <= _LANE:
        tl = L                                  # full extent (legal for any L)
    else:
        tl_cap = budget // max(1, tb * (C + 1) * itemsize)
        tl = max(_LANE, min((tl_cap // _LANE) * _LANE, (L // _LANE) * _LANE))

    # --- guarantee >= 2 parallel grid steps for large tensors (v7x 2 TCs) ---
    total_in_bytes = B * C * L * itemsize
    if total_in_bytes > _SPLIT_THRESHOLD and pl.cdiv(B, tb) * pl.cdiv(L, tl) < 2:
        if L > _LANE:
            half = pl.cdiv(L, 2)
            tl = max(_LANE, ((half + _LANE - 1) // _LANE) * _LANE)
        elif B > 1:
            tb = max(1, pl.cdiv(B, 2))

    return tb, tl


def global_max_pool1d(x: jax.Array, *, tb: int | None = None, tl: int | None = None) -> jax.Array:
    """Pallas equivalent of GlobalMaxPool1d.forward: torch.max(x, 1)[0].

    Args:
      x: (B, C, L) array.
      tb, tl: optional tile-size overrides (batch tile, length tile). When
        given, tb must be a multiple of 8 or equal B, tl a multiple of 128 or
        equal L.
    Returns:
      (B, L) array: max over the channel axis.
    """
    B, C, L = x.shape
    itemsize = jnp.dtype(x.dtype).itemsize

    budget, vmem_clamp = _vmem_budgets()
    auto_tb, auto_tl = _choose_tiles(B, C, L, itemsize, budget)
    tb = auto_tb if tb is None else tb
    tl = auto_tl if tl is None else tl

    grid = (pl.cdiv(B, tb), pl.cdiv(L, tl))

    in_block_bytes = tb * C * tl * itemsize
    out_block_bytes = tb * tl * itemsize
    # 2x for double buffering, 2x headroom, clamped to a generation-safe range.
    vmem_limit = int(min(max(4 * (in_block_bytes + out_block_bytes), 16 * _MiB),
                         vmem_clamp))

    cost = pl.CostEstimate(
        flops=B * C * L,                                   # one max-compare per element
        transcendentals=0,
        bytes_accessed=(B * C * L + B * L) * itemsize,
    )

    return pl.pallas_call(
        _global_max_pool_kernel,
        out_shape=jax.ShapeDtypeStruct((B, L), x.dtype),
        grid=grid,
        in_specs=[pl.BlockSpec((tb, C, tl), lambda b, l: (b, 0, l))],
        out_specs=pl.BlockSpec((tb, tl), lambda b, l: (b, l)),
        compiler_params=pltpu.CompilerParams(
            dimension_semantics=("parallel", "parallel"),
            vmem_limit_bytes=vmem_limit,
        ),
        cost_estimate=cost,
    )(x)


if __name__ == "__main__":
    key = jax.random.PRNGKey(0)

    # 1) Small shape consistent with the module: batch=2, channels=4, length=16.
    B, C, L = 2, 4, 16
    x = jax.random.normal(key, (B, C, L), dtype=jnp.float32)
    out = jax.block_until_ready(global_max_pool1d(x))
    ref = jnp.max(x, axis=1)
    assert out.shape == (B, L), out.shape
    assert jnp.allclose(out, ref), "mismatch vs reference (small shape)"

    # 2) Lane-aligned shape with explicit tiles to exercise the multi-tile grid
    #    path (grid = (2, 2)): batch=16, channels=8, length=256.
    key2 = jax.random.PRNGKey(1)
    x2 = jax.random.normal(key2, (16, 8, 256), dtype=jnp.float32)
    out2 = jax.block_until_ready(global_max_pool1d(x2, tb=8, tl=128))
    ref2 = jnp.max(x2, axis=1)
    assert out2.shape == (16, 256), out2.shape
    assert jnp.allclose(out2, ref2), "mismatch vs reference (gridded shape)"

    # 3) Unaligned length (L % 128 != 0, L > 128) to exercise the 128-multiple
    #    TL path with a masked partial edge block: batch=4, channels=6, length=300.
    key3 = jax.random.PRNGKey(2)
    x3 = jax.random.normal(key3, (4, 6, 300), dtype=jnp.float32)
    out3 = jax.block_until_ready(global_max_pool1d(x3))
    ref3 = jnp.max(x3, axis=1)
    assert out3.shape == (4, 300), out3.shape
    assert jnp.allclose(out3, ref3), "mismatch vs reference (unaligned L)"

    print("KERNEL_OK")
</pallas_src>

<mosaic_0001>
module attributes {stable_mosaic.version = 11 : i64} {
  func.func @_global_max_pool_kernel(%arg0: i32, %arg1: i32, %arg2: memref<2x4x16xf32, #tpu.memory_space<vmem>>, %arg3: memref<2x16xf32, #tpu.memory_space<vmem>>) attributes {dimension_semantics = [#tpu.dimension_semantics<parallel>, #tpu.dimension_semantics<parallel>], iteration_bounds = array<i64: 1, 1>, scalar_prefetch = 0 : i64, scratch_operands = 0 : i64, tpu.core_type = #tpu.core_type<tc>, window_params = [{transform_indices = @transform_0, window_bounds = array<i64: 2, 4, 16>}, {transform_indices = @transform_1, window_bounds = array<i64: 2, 16>}]} {
    %c0 = arith.constant 0 : index
    %c0_0 = arith.constant 0 : index
    %c0_1 = arith.constant 0 : index
    %0 = vector.load %arg2[%c0, %c0_0, %c0_1] : memref<2x4x16xf32, #tpu.memory_space<vmem>>, vector<2x4x16xf32>
    %cst = arith.constant dense<0xFF800000> : vector<2x16xf32>
    %1 = vector.multi_reduction <maximumf>, %0, %cst [1] : vector<2x4x16xf32> to vector<2x16xf32>
    %c0_2 = arith.constant 0 : index
    %c0_3 = arith.constant 0 : index
    %2 = vector.load %arg3[%c0_2, %c0_3] : memref<2x16xf32, #tpu.memory_space<vmem>>, vector<2x16xf32>
    tpu.vector_store %arg3[%c0_2, %c0_3], %1 {strides = array<i32>} : memref<2x16xf32, #tpu.memory_space<vmem>>, vector<2x16xf32>,
    return
  }
  func.func @transform_0(%arg0: i32, %arg1: i32) -> (i32, i32, i32) {
    %c0_i32 = arith.constant 0 : i32
    %c0_i32_0 = arith.constant 0 : i32
    return %arg0, %c0_i32, %arg1 : i32, i32, i32
  }
  func.func @transform_1(%arg0: i32, %arg1: i32) -> (i32, i32) {
    %c0_i32 = arith.constant 0 : i32
    return %arg0, %arg1 : i32, i32
  }
}

</mosaic_0001>

<bundles_post_ra>
// kernel: tpu_custom_call.1
= control target key start
LH: loop header
LB: loop body
LE: loop exit
PB: predicated region body
PF: predicated region fallthrough
CT: control target
= control target key end

     0   :  { %6 = vsyncpa [#allocation3], 0  ;;  %s152_s0 = inlined_call_operand.hbm [shape: f32[2,4,16], index: 0, kind: input, shape index: {}]   ;;  %s153_s1 = inlined_call_operand.hbm [shape: f32[2,16], index: 1, kind: output, shape index: {}]  }
   0x1   :  { %7 = vsyncpa [#allocation4], 0  ;;  %s114_s6 = smov [#allocation2]   ;;  %s66_s10 = scalar_lea.hbm %s152_s0, 128 }
   0x2   :  { %s13_s7 = sshll.u32 %s114_s6, 4  ;;  %p67_p0 = scmp.ne.s32.totalorder %s152_s0, %s66_s10  ;;  %s14_s7 = int_to_ptr.vmem [resolvable:$true] %s13_s7 }
   0x3   :  { %p70_p1 = scmp.lt.u32.totalorder %s66_s10, %s152_s0 }
   0x5   :  { %p72_p2 = pnand %p70_p1, %p67_p0 }
   0x7   :  { %75 = shalt.err (!%p72_p2)
}
   0x8   :  { %s76_s15 = scalar_lea.vmem %s14_s7, 128  ;;  %p81_p4 = scmp.lt.s32.totalorder %s14_s7, %s14_s7 }
   0x9   :  { %p77_p3 = scmp.ne.s32.totalorder %s14_s7, %s76_s15  ;;  %p82_p5 = scmp.lt.s32.totalorder %s76_s15, %s76_s15 }
   0xb   :  { %p83_p6 = por %p82_p5, %p81_p4 }
   0xd   :  { %p84_p7 = pnand %p83_p6, %p77_p3 }
   0xf   :  { %87 = shalt.err (!%p84_p7)
}
  0x10   :  { %s115_s16 = smov 64   ;;  %s116_s17 = smov 4  }
  0x11   :  { %19 = dma.hbm_to_vmem [thread:$0]  %s152_s0, 128, %s14_s7, [#allocation3], %s115_s16, %s115_s16, %s116_s17  }
  0x12   :  { %110 = dma.done.wait [#allocation3], 128  }
  0x13   :  { %111 = vsyncadd [#allocation3], 4294967168  ;;  %vm25_vm0 = vcmask 125952   ;;  %v23_v0 = vld [vmem:[#allocation2] sm:$0xf]  ;;  %s117_s20 = smov [#allocation5]  }
  0x14   :  { %v24_v1 = vld [vmem:[#allocation2 + $0x4] sm:$0xf]  ;;  %v26_v2 = vsel %vm25_vm0, %v23_v0, -inf  ;;  %s53_s21 = sshll.u32 %s117_s20, 4  ;;  %vm42_vm1 = vcmask 1041409   ;;  %vm45_vm2 = vcmask 123904   ;;  %s54_s21 = int_to_ptr.vmem [resolvable:$true] %s53_s21 }
  0x15   :  { %v33_v3 = vsel %vm25_vm0, %v24_v1, -inf  ;;  %v27_v4 = vrot.slane %v26_v2, 4  ;;  %s88_s0 = scalar_lea.vmem %s54_s21, 32  ;;  %p93_p9 = scmp.lt.s32.totalorder %s54_s21, %s54_s21 }
  0x16   :  { %v34_v5 = vrot.slane %v33_v3, 4  ;;  %p89_p8 = scmp.ne.s32.totalorder %s54_s21, %s88_s0  ;;  %p94_p10 = scmp.lt.s32.totalorder %s88_s0, %s88_s0 }
  0x17   :  { %v28_v6 = vmax.f32 %v26_v2, %v27_v4 }
  0x18   :  { %v35_v7 = vmax.f32 %v33_v3, %v34_v5  ;;  %p95_p11 = por %p94_p10, %p93_p9 }
  0x19   :  { %v29_v8 = vrot.slane %v28_v6, 2 }
  0x1a   :  { %v36_v9 = vrot.slane %v35_v7, 2  ;;  %p96_p12 = pnand %p95_p11, %p89_p8 }
  0x1b   :  { %v30_v10 = vmax.f32 %v28_v6, %v29_v8 }
  0x1c   :  { %v37_v11 = vmax.f32 %v35_v7, %v36_v9 }
  0x1d   :  { %v31_v12 = vrot.slane %v30_v10, 1 }
  0x1e   :  { %v38_v13 = vrot.slane %v37_v11, 1 }
  0x1f   :  { %v32_v14 = vmax.f32 %v30_v10, %v31_v12 }
  0x20   :  { %v39_v15 = vmax.f32 %v37_v11, %v38_v13 }
  0x22   :  { %v43_v16 = vsel %vm42_vm1, %v39_v15, %v32_v14 }
  0x23   :  { %46 = vst.msk [vmem:[#allocation5] sm:$0x3] %vm45_vm2, %v43_v16 }
  0x24   :  { %99 = shalt.err (!%p96_p12)
}
  0x25   :  { %s100_s24 = scalar_lea.hbm %s153_s1, 32 }
  0x26   :  { %p101_p13 = scmp.ne.s32.totalorder %s153_s1, %s100_s24  ;;  %p104_p0 = scmp.lt.u32.totalorder %s100_s24, %s153_s1 }
  0x28   :  { %p106_p1 = pnand %p104_p0, %p101_p13 }
  0x2a   :  { %109 = shalt.err (!%p106_p1)
}
  0x2b   :  { %56 = dma.vmem_to_hbm [thread:$0]  %s54_s21, 32, %s153_s1, [#allocation4]  }
  0x2c   :  { %112 = dma.done.wait [#allocation4], 32  }
  0x2d   :  { %113 = vsyncadd [#allocation4], 4294967264 }
  0x2e   :  { %60 = vsyncpa [#allocation3], 1 }
  0x2f   :  { %61 = vsyncpa [#allocation4], 1 }

</bundles_post_ra>
